<compile_context>
chip_gen: v6e
topology: v6e:2x2x1
jax: 0.10.0
libtpu: 0.0.40
codegen_flags: <defaults>
</compile_context>

<pallas_src>
import jax
import jax.numpy as jnp
from jax.experimental import pallas as pl
from jax.experimental.pallas import tpu as pltpu

LANE = 128
TARGET_ROWS = 256  # MXU M-dimension target (v6e/v7x: 256-wide systolic array)


def gcn_kernel(adj_ref, feat_ref, w1_ref, b1_ref, w2_ref, out_ref):
    b_blk, n, _ = adj_ref.shape
    out_cols = out_ref.shape[-1]

    adj = adj_ref[...]    # (B_blk, N, N)      bf16, reused by both layers
    feat = feat_ref[...]  # (B_blk, N, IN_PAD) bf16, lane-dense

    # ---- layer 1: GraphConv(in_size, out_size, activation=Tanh()) ----
    # aggregate-then-transform: N x N aggregation in the narrow input space,
    # then one big (B_blk*N, IN_PAD) x (IN_PAD, OUT_PAD) transform on the MXU.
    t = jnp.einsum("bij,bjk->bik", adj, feat,
                   preferred_element_type=jnp.float32)         # (B_blk, N, IN_PAD)
    t2 = t.reshape(b_blk * n, -1).astype(jnp.bfloat16)
    h1 = jnp.dot(t2, w1_ref[...],
                 preferred_element_type=jnp.float32)           # (B_blk*N, OUT_PAD)
    h1 = jnp.tanh(h1 + b1_ref[...])                            # f32 bias + tanh

    # ---- layer 2: GraphConv(out_size, out_size, bias=False) ----
    s2 = jnp.dot(h1.astype(jnp.bfloat16), w2_ref[...],
                 preferred_element_type=jnp.float32)           # (B_blk*N, OUT_PAD)
    s2 = s2.reshape(b_blk, n, -1).astype(jnp.bfloat16)
    out = jnp.einsum("bij,bjk->bik", adj, s2,
                     preferred_element_type=jnp.float32)       # (B_blk, N, OUT_PAD)

    # Store only the real output columns (masked 32-lane store); avoids an
    # extra wrapper-side slice/copy kernel over a 4x-padded f32 tensor.
    out_ref[...] = out[..., :out_cols]


def _pad_last(x, target):
    pad = target - x.shape[-1]
    if pad == 0:
        return x
    widths = [(0, 0)] * x.ndim
    widths[-1] = (0, pad)
    return jnp.pad(x, widths)


def _pad2(x, rows, cols):
    return jnp.pad(x, ((0, rows - x.shape[0]), (0, cols - x.shape[1])))


def prepare_params(w1, b1, w2):
    """Pad weights to 128 lanes and cast to bf16 ONCE (hoisted out of hot path)."""
    in_size, out_size = w1.shape
    in_pad = pl.cdiv(in_size, LANE) * LANE
    out_pad = pl.cdiv(out_size, LANE) * LANE
    w1_p = _pad2(w1, in_pad, out_pad).astype(jnp.bfloat16)
    # b1 padded with zeros (invariant: padded cols -> tanh(0+0)=0). Kept f32.
    b1_p = _pad_last(b1.reshape(1, out_size), out_pad).astype(jnp.float32)
    w2_p = _pad2(w2, out_pad, out_pad).astype(jnp.bfloat16)
    return w1_p, b1_p, w2_p


def _pick_b_blk(batch, n, target_rows=TARGET_ROWS):
    """Largest divisor of batch s.t. b_blk * n <= target MXU M rows."""
    best = 1
    for d in range(1, batch + 1):
        if batch % d == 0 and d * n <= max(target_rows, n):
            best = d
    return best


def gcn_forward(adj, feat, w1_p, b1_p, w2_p, out_size):
    """adj: [B, N, N] f32, feat: [B, N, IN] f32 -> [B, N, out_size] f32."""
    B, N, _ = adj.shape
    in_pad = w1_p.shape[0]
    out_pad = w1_p.shape[1]
    b_blk = _pick_b_blk(B, N)

    # Ship the big per-graph operands as bf16 (halves HBM->VMEM bytes).
    adj_b = adj.astype(jnp.bfloat16)
    feat_p = _pad_last(feat, in_pad).astype(jnp.bfloat16)

    return pl.pallas_call(
        gcn_kernel,
        out_shape=jax.ShapeDtypeStruct((B, N, out_size), jnp.float32),
        grid=(B // b_blk,),
        in_specs=[
            pl.BlockSpec((b_blk, N, N), lambda b: (b, 0, 0)),
            pl.BlockSpec((b_blk, N, in_pad), lambda b: (b, 0, 0)),
            pl.BlockSpec((in_pad, out_pad), lambda b: (0, 0)),
            pl.BlockSpec((1, out_pad), lambda b: (0, 0)),
            pl.BlockSpec((out_pad, out_pad), lambda b: (0, 0)),
        ],
        out_specs=pl.BlockSpec((b_blk, N, out_size), lambda b: (b, 0, 0)),
        compiler_params=pltpu.CompilerParams(
            dimension_semantics=("parallel",)),
    )(adj_b, feat_p, w1_p, b1_p, w2_p)


def reference_forward(adj, feat, w1, b1, w2):
    h = jnp.tanh(jnp.einsum("bij,bjk->bik", adj, feat @ w1) + b1[None, None, :])
    return jnp.einsum("bij,bjk->bik", adj, h @ w2)


if __name__ == "__main__":
    key = jax.random.PRNGKey(0)
    k_adj, k_feat, k_w1, k_b1, k_w2 = jax.random.split(key, 5)

    B = 4           # batch of independent graphs
    N = 32          # nodes per graph
    IN_SIZE = 16    # input feature size
    OUT_SIZE = 32   # hidden / output feature size

    # Symmetric row-normalized adjacency per graph (self-loops included).
    a = (jax.random.uniform(k_adj, (B, N, N)) > 0.7).astype(jnp.float32)
    a = jnp.maximum(a, jnp.swapaxes(a, -1, -2)) + jnp.eye(N, dtype=jnp.float32)[None]
    adj = a / jnp.sum(a, axis=-1, keepdims=True)

    feat = jax.random.normal(k_feat, (B, N, IN_SIZE), dtype=jnp.float32)

    # Deterministic Glorot-style parameter init (matches GraphConv shapes).
    w1 = jax.random.normal(k_w1, (IN_SIZE, OUT_SIZE), dtype=jnp.float32) / jnp.sqrt(
        jnp.float32(IN_SIZE))
    b1 = jax.random.normal(k_b1, (OUT_SIZE,), dtype=jnp.float32) * 0.1
    w2 = jax.random.normal(k_w2, (OUT_SIZE, OUT_SIZE), dtype=jnp.float32) / jnp.sqrt(
        jnp.float32(OUT_SIZE))

    w1_p, b1_p, w2_p = prepare_params(w1, b1, w2)   # pad/cast once, outside hot path
    out = jax.block_until_ready(
        gcn_forward(adj, feat, w1_p, b1_p, w2_p, out_size=OUT_SIZE))
    ref = reference_forward(adj, feat, w1, b1, w2)

    assert out.shape == (B, N, OUT_SIZE)
    # bf16 MXU operands (adj, feat, weights) with f32 accumulation across two
    # cascaded layers -> relaxed tolerance vs the f32 reference.
    max_err = float(jnp.max(jnp.abs(out - ref)))
    assert jnp.allclose(out, ref, atol=5e-2, rtol=5e-2), f"mismatch, max err {max_err}"

    print("KERNEL_OK")
</pallas_src>

<mosaic_0001>
module attributes {stable_mosaic.version = 11 : i64} {
  func.func @gcn_kernel(%arg0: i32, %arg1: memref<4x32x32xbf16, #tpu.memory_space<vmem>>, %arg2: memref<4x32x128xbf16, #tpu.memory_space<vmem>>, %arg3: memref<128x128xbf16, #tpu.memory_space<vmem>>, %arg4: memref<1x128xf32, #tpu.memory_space<vmem>>, %arg5: memref<128x128xbf16, #tpu.memory_space<vmem>>, %arg6: memref<4x32x32xf32, #tpu.memory_space<vmem>>) attributes {dimension_semantics = [#tpu.dimension_semantics<parallel>], iteration_bounds = array<i64: 1>, scalar_prefetch = 0 : i64, scratch_operands = 0 : i64, tpu.core_type = #tpu.core_type<tc>, window_params = [{transform_indices = @transform_0, window_bounds = array<i64: 4, 32, 32>}, {transform_indices = @transform_1, window_bounds = array<i64: 4, 32, 128>}, {pipeline_mode = #tpu.pipeline_mode<synchronous>, transform_indices = @transform_2, window_bounds = array<i64: 128, 128>}, {pipeline_mode = #tpu.pipeline_mode<synchronous>, transform_indices = @transform_3, window_bounds = array<i64: 1, 128>}, {pipeline_mode = #tpu.pipeline_mode<synchronous>, transform_indices = @transform_4, window_bounds = array<i64: 128, 128>}, {transform_indices = @transform_5, window_bounds = array<i64: 4, 32, 32>}]} {
    %c0 = arith.constant 0 : index
    %c0_0 = arith.constant 0 : index
    %c0_1 = arith.constant 0 : index
    %0 = vector.load %arg1[%c0, %c0_0, %c0_1] : memref<4x32x32xbf16, #tpu.memory_space<vmem>>, vector<4x32x32xbf16>
    %c0_2 = arith.constant 0 : index
    %c0_3 = arith.constant 0 : index
    %c0_4 = arith.constant 0 : index
    %1 = vector.load %arg2[%c0_2, %c0_3, %c0_4] : memref<4x32x128xbf16, #tpu.memory_space<vmem>>, vector<4x32x128xbf16>
    "tpu.trace_start"() <{level = 10 : i32, message = "bij,bjk->bik"}> : () -> ()
    %cst = arith.constant dense<0.000000e+00> : vector<4x32x128xf32>
    %2 = tpu.matmul %0, %1, %cst {dimension_numbers = #tpu.dot_dimension_numbers<[2], [1], [1], [2], [0, 0, 0, 1, 1, 2], [0], [0]>} : vector<4x32x32xbf16>, vector<4x32x128xbf16>, vector<4x32x128xf32> -> vector<4x32x128xf32>
    "tpu.trace_stop"() : () -> ()
    %3 = vector.shape_cast %2 : vector<4x32x128xf32> to vector<128x128xf32>
    %4 = arith.truncf %3 : vector<128x128xf32> to vector<128x128xbf16>
    %c0_5 = arith.constant 0 : index
    %c0_6 = arith.constant 0 : index
    %5 = vector.load %arg3[%c0_5, %c0_6] : memref<128x128xbf16, #tpu.memory_space<vmem>>, vector<128x128xbf16>
    %cst_7 = arith.constant dense<0.000000e+00> : vector<128x128xf32>
    %6 = tpu.matmul %4, %5, %cst_7 {dimension_numbers = #tpu.dot_dimension_numbers<[1], [0], [0], [1], [0, 0, 1, 1], [], []>} : vector<128x128xbf16>, vector<128x128xbf16>, vector<128x128xf32> -> vector<128x128xf32>
    %c0_8 = arith.constant 0 : index
    %c0_9 = arith.constant 0 : index
    %7 = vector.load %arg4[%c0_8, %c0_9] : memref<1x128xf32, #tpu.memory_space<vmem>>, vector<1x128xf32>
    %8 = vector.broadcast %7 : vector<1x128xf32> to vector<128x128xf32>
    %9 = arith.addf %6, %8 : vector<128x128xf32>
    %10 = math.tanh %9 : vector<128x128xf32>
    %11 = arith.truncf %10 : vector<128x128xf32> to vector<128x128xbf16>
    %c0_10 = arith.constant 0 : index
    %c0_11 = arith.constant 0 : index
    %12 = vector.load %arg5[%c0_10, %c0_11] : memref<128x128xbf16, #tpu.memory_space<vmem>>, vector<128x128xbf16>
    %cst_12 = arith.constant dense<0.000000e+00> : vector<128x128xf32>
    %13 = tpu.matmul %11, %12, %cst_12 {dimension_numbers = #tpu.dot_dimension_numbers<[1], [0], [0], [1], [0, 0, 1, 1], [], []>} : vector<128x128xbf16>, vector<128x128xbf16>, vector<128x128xf32> -> vector<128x128xf32>
    %14 = vector.shape_cast %13 : vector<128x128xf32> to vector<4x32x128xf32>
    %15 = arith.truncf %14 : vector<4x32x128xf32> to vector<4x32x128xbf16>
    "tpu.trace_start"() <{level = 10 : i32, message = "bij,bjk->bik"}> : () -> ()
    %cst_13 = arith.constant dense<0.000000e+00> : vector<4x32x128xf32>
    %16 = tpu.matmul %0, %15, %cst_13 {dimension_numbers = #tpu.dot_dimension_numbers<[2], [1], [1], [2], [0, 0, 0, 1, 1, 2], [0], [0]>} : vector<4x32x32xbf16>, vector<4x32x128xbf16>, vector<4x32x128xf32> -> vector<4x32x128xf32>
    "tpu.trace_stop"() : () -> ()
    %17 = vector.extract_strided_slice %16 {offsets = [0, 0, 0], sizes = [4, 32, 32], strides = [1, 1, 1]} : vector<4x32x128xf32> to vector<4x32x32xf32>
    %c0_14 = arith.constant 0 : index
    %c0_15 = arith.constant 0 : index
    %c0_16 = arith.constant 0 : index
    %18 = vector.load %arg6[%c0_14, %c0_15, %c0_16] : memref<4x32x32xf32, #tpu.memory_space<vmem>>, vector<4x32x32xf32>
    tpu.vector_store %arg6[%c0_14, %c0_15, %c0_16], %17 {strides = array<i32>} : memref<4x32x32xf32, #tpu.memory_space<vmem>>, vector<4x32x32xf32>,
    return
  }
  func.func @transform_0(%arg0: i32) -> (i32, i32, i32) {
    %c0_i32 = arith.constant 0 : i32
    %c0_i32_0 = arith.constant 0 : i32
    %c0_i32_1 = arith.constant 0 : i32
    return %arg0, %c0_i32, %c0_i32_0 : i32, i32, i32
  }
  func.func @transform_1(%arg0: i32) -> (i32, i32, i32) {
    %c0_i32 = arith.constant 0 : i32
    %c0_i32_0 = arith.constant 0 : i32
    %c0_i32_1 = arith.constant 0 : i32
    return %arg0, %c0_i32, %c0_i32_0 : i32, i32, i32
  }
  func.func @transform_2(%arg0: i32) -> (i32, i32) {
    %c0_i32 = arith.constant 0 : i32
    %c0_i32_0 = arith.constant 0 : i32
    %c0_i32_1 = arith.constant 0 : i32
    return %c0_i32, %c0_i32_0 : i32, i32
  }
  func.func @transform_3(%arg0: i32) -> (i32, i32) {
    %c0_i32 = arith.constant 0 : i32
    %c0_i32_0 = arith.constant 0 : i32
    %c0_i32_1 = arith.constant 0 : i32
    return %c0_i32, %c0_i32_0 : i32, i32
  }
  func.func @transform_4(%arg0: i32) -> (i32, i32) {
    %c0_i32 = arith.constant 0 : i32
    %c0_i32_0 = arith.constant 0 : i32
    %c0_i32_1 = arith.constant 0 : i32
    return %c0_i32, %c0_i32_0 : i32, i32
  }
  func.func @transform_5(%arg0: i32) -> (i32, i32, i32) {
    %c0_i32 = arith.constant 0 : i32
    %c0_i32_0 = arith.constant 0 : i32
    %c0_i32_1 = arith.constant 0 : i32
    return %arg0, %c0_i32, %c0_i32_0 : i32, i32, i32
  }
}

</mosaic_0001>

<bundles_post_ra>
// kernel: tpu_custom_call.1
= control target key start
LH: loop header
LB: loop body
LE: loop exit
PB: predicated region body
PF: predicated region fallthrough
CT: control target
= control target key end

     0   :  { %10 = vsyncpa [#allocation3], 0  ;;  %s1573_s0 = inlined_call_operand.hbm [shape: bf16[4,32,32], index: 0, kind: input, shape index: {}]   ;;  %s1574_s1 = inlined_call_operand.hbm [shape: bf16[4,32,128], index: 1, kind: input, shape index: {}]   ;;  %s1575_s2 = inlined_call_operand.hbm [shape: bf16[128,128], index: 2, kind: input, shape index: {}]   ;;  %s1576_s3 = inlined_call_operand.vmem [shape: f32[1,128], index: 3, kind: input, shape index: {}]   ;;  %s1577_s4 = inlined_call_operand.hbm [shape: bf16[128,128], index: 4, kind: input, shape index: {}]   ;;  %s1578_s5 = inlined_call_operand.hbm [shape: f32[4,32,32], index: 5, kind: output, shape index: {}]  }
   0x1   :  { %11 = vsyncpa [#allocation6], 0 }
   0x2   :  { %12 = vsyncpa [#allocation9], 0 }
   0x3   :  { %13 = vsyncpa [#allocation4], 0  ;;  %s1440_s18 = smov [#allocation5]   ;;  %s1441_s20 = smov [#allocation2]  }
   0x4   :  { %s31_s19 = sshll.u32 %s1440_s18, 4  ;;  %s19_s21 = sshll.u32 %s1441_s20, 4  ;;  %s32_s19 = int_to_ptr.vmem [resolvable:$true] %s31_s19  ;;  %s20_s21 = int_to_ptr.vmem [resolvable:$true] %s19_s21 }
   0x5   :  { %s1340_s22 = scalar_lea.vmem %s32_s19, 1024  ;;  %p1345_p1 = scmp.lt.s32.totalorder %s32_s19, %s32_s19 }
   0x6   :  { %p1341_p0 = scmp.ne.s32.totalorder %s32_s19, %s1340_s22  ;;  %p1346_p2 = scmp.lt.s32.totalorder %s1340_s22, %s1340_s22 }
   0x8   :  { %p1347_p3 = por %p1346_p2, %p1345_p1 }
   0xa   :  { %p1348_p4 = pnand %p1347_p3, %p1341_p0 }
   0xc   :  { %1351 = shalt.err (!%p1348_p4)
}
   0xd   :  { %s1442_s23 = smov 64   ;;  %s1443_s24 = smov 4  }
   0xe   :  { %37 = dma.hbm_to_vmem [thread:$0]  %s1574_s1, 1024, %s32_s19, [#allocation6], %s1442_s23, %s1442_s23, %s1443_s24  }
   0xf   :  { %s1360_s27 = scalar_lea.vmem %s20_s21, 1024  ;;  %p1365_p6 = scmp.lt.s32.totalorder %s20_s21, %s20_s21 }
  0x10   :  { %p1361_p5 = scmp.ne.s32.totalorder %s20_s21, %s1360_s27  ;;  %p1366_p7 = scmp.lt.s32.totalorder %s1360_s27, %s1360_s27 }
  0x12   :  { %p1367_p8 = por %p1366_p7, %p1365_p6 }
  0x14   :  { %p1368_p9 = pnand %p1367_p8, %p1361_p5 }
  0x16   :  { %1371 = shalt.err (!%p1368_p9)
}
  0x17   :  { %25 = dma.hbm_to_vmem [thread:$0]  %s1573_s0, 1024, %s20_s21, [#allocation3], %s1442_s23, %s1442_s23, %s1443_s24  }
  0x18   :  { %s1444_s30 = smov [#allocation7]   ;;  %s1445_s7 = smov [#allocation8]  }
  0x19   :  { %s43_s6 = sshll.u32 %s1444_s30, 4  ;;  %s57_s8 = sshll.u32 %s1445_s7, 4  ;;  %s44_s6 = int_to_ptr.vmem [resolvable:$true] %s43_s6  ;;  %s58_s8 = int_to_ptr.vmem [resolvable:$true] %s57_s8 }
  0x1a   :  { %s1380_s1 = scalar_lea.vmem %s44_s6, 1024  ;;  %p1385_p11 = scmp.lt.s32.totalorder %s44_s6, %s44_s6 }
  0x1b   :  { %p1381_p10 = scmp.ne.s32.totalorder %s44_s6, %s1380_s1  ;;  %p1386_p12 = scmp.lt.s32.totalorder %s1380_s1, %s1380_s1 }
  0x1d   :  { %p1387_p13 = por %p1386_p12, %p1385_p11 }
  0x1f   :  { %p1388_p0 = pnand %p1387_p13, %p1381_p10 }
  0x21   :  { %1391 = shalt.err (!%p1388_p0)
}
  0x22   :  { %49 = dma.hbm_to_vmem [thread:$0]  %s1575_s2, 1024, %s44_s6, [#allocation6], %s1442_s23, %s1442_s23, %s1443_s24  }
  0x23   :  { %s1400_s0 = scalar_lea.vmem %s58_s8, 1024  ;;  %p1405_p2 = scmp.lt.s32.totalorder %s58_s8, %s58_s8 }
  0x24   :  { %p1401_p1 = scmp.ne.s32.totalorder %s58_s8, %s1400_s0  ;;  %p1406_p3 = scmp.lt.s32.totalorder %s1400_s0, %s1400_s0 }
  0x26   :  { %p1407_p4 = por %p1406_p3, %p1405_p2 }
  0x28   :  { %p1408_p5 = pnand %p1407_p4, %p1401_p1 }
  0x2a   :  { %1411 = shalt.err (!%p1408_p5)
}
  0x2b   :  { %63 = dma.hbm_to_vmem [thread:$0]  %s1577_s4, 1024, %s58_s8, [#allocation9], %s1442_s23, %s1442_s23, %s1443_s24  }
  0x2c   :  { %1432 = dma.done.wait [#allocation3], 1024  }
  0x2d   :  { %1433 = vsyncadd [#allocation3], 4294966272 }
  0x2e   :  { %1434 = dma.done.wait [#allocation6], 2048  }
  0x2f   :  { %1435 = vsyncadd [#allocation6], 4294965248 }
  0x30   :  { %1436 = dma.done.wait [#allocation9], 1024  }
  0x31   :  { %1437 = vsyncadd [#allocation9], 4294966272  ;;  %v1268_v0 = vld [vmem:[#allocation5 + $0x8] sm:$0xff]   ;;  %v1269_v1 = vld [vmem:[#allocation5 + $0x18] sm:$0xff]   ;;  %vm131_vm0 = vcmask 261120  }
  0x32   :  { %1131 = vmatprep.subr.bf16.mxu0 %v1268_v0  ;;  %v1270_v2 = vld [vmem:[#allocation5] sm:$0xff]   ;;  %1139 = vmatprep.subr.bf16.mxu1 %v1269_v1  ;;  %v1271_v3 = vld [vmem:[#allocation5 + $0x10] sm:$0xff]   ;;  %v1505_v5 = vld [vmem:[#allocation2 + $0x8] sm:$0xff]  }
  0x33   :  { %1132 = vmatpush3.bf16.msra.mxu0 %v1268_v0  ;;  %1140 = vmatpush3.bf16.msra.mxu1 %v1269_v1  ;;  %v1503_v4 = vld [vmem:[#allocation2] sm:$0xff]   ;;  %v1509_v6 = vld [vmem:[#allocation2 + $0x10] sm:$0xff]   ;;  %v1511_v7 = vld [vmem:[#allocation2 + $0x18] sm:$0xff]  }
  0x34   :  { %1133 = vmatprep.subr.bf16.mxu0 %v1270_v2  ;;  %1141 = vmatprep.subr.bf16.mxu1 %v1271_v3  ;;  %v1276_v8 = vld [vmem:[#allocation5 + $0x28] sm:$0xff]   ;;  %v1277_v9 = vld [vmem:[#allocation5 + $0x20] sm:$0xff]   ;;  %v1280_v12 = vld [vmem:[#allocation5 + $0x38] sm:$0xff]  }
  0x35   :  { %1135 = vmatprep.mubr.msk.bf16.mxu0 %vm131_vm0, %v1503_v4  ;;  %1143 = vmatprep.mubr.msk.bf16.mxu1 %vm131_vm0, %v1509_v6  ;;  %v1517_v10 = vld [vmem:[#allocation2 + $0x20] sm:$0xff]   ;;  %v1523_v11 = vld [vmem:[#allocation2 + $0x28] sm:$0xff]   ;;  %v1281_v13 = vld [vmem:[#allocation5 + $0x30] sm:$0xff]  }
  0x36   :  { %v1525_v14 = vld [vmem:[#allocation2 + $0x30] sm:$0xff]   ;;  %v1284_v15 = vld [vmem:[#allocation7 + $0x38] sm:$0xff]   ;;  %v1286_v18 = vld [vmem:[#allocation7 + $0x28] sm:$0xff]  }
  0x37   :  { %1134 = vmatpush3.bf16.msra.mxu0 %v1270_v2  ;;  %1142 = vmatpush3.bf16.msra.mxu1 %v1271_v3  ;;  %v1285_v16 = vld [vmem:[#allocation7 + $0x30] sm:$0xff]   ;;  %v1531_v17 = vld [vmem:[#allocation2 + $0x38] sm:$0xff]   ;;  %v1287_v19 = vld [vmem:[#allocation7 + $0x20] sm:$0xff]  }
  0x38   :  { %1147 = vmatprep.subr.bf16.mxu0 %v1276_v8  ;;  %1155 = vmatprep.subr.bf16.mxu1 %v1280_v12  ;;  %v1288_v20 = vld [vmem:[#allocation7 + $0x18] sm:$0xff]   ;;  %v1289_v21 = vld [vmem:[#allocation7 + $0x10] sm:$0xff]   ;;  %v1290_v22 = vld [vmem:[#allocation7 + $0x8] sm:$0xff]  }
  0x39   :  { %v1291_v23 = vld [vmem:[#allocation7] sm:$0xff]   ;;  %v1292_v24 = vld [vmem:[#allocation8 + $0x38] sm:$0xff]   ;;  %v1293_v25 = vld [vmem:[#allocation8 + $0x30] sm:$0xff]  }
  0x3a   :  { %1136 = vmatmul.mubr.msk.bf16.vlgmr.msra.gmra.mxu0 %vm131_vm0, %v1505_v5  ;;  %1144 = vmatmul.mubr.msk.bf16.vlgmr.msra.gmra.mxu1 %vm131_vm0, %v1511_v7  ;;  %v1294_v50 = vld [vmem:[#allocation8 + $0x28] sm:$0xff]   ;;  %v1295_v51 = vld [vmem:[#allocation8 + $0x20] sm:$0xff]   ;;  %v1296_v52 = vld [vmem:[#allocation8 + $0x18] sm:$0xff]  }
  0x3b   :  { %1148 = vmatpush3.bf16.msra.mxu0 %v1276_v8  ;;  %1151 = vmatprep.mubr.msk.bf16.mxu0 %vm131_vm0, %v1517_v10  ;;  %v1297_v53 = vld [vmem:[#allocation8 + $0x10] sm:$0xff]   ;;  %v1298_v54 = vld [vmem:[#allocation8 + $0x8] sm:$0xff]   ;;  %v1299_v55 = vld [vmem:[#allocation8] sm:$0xff]  }
  0x3c   :  { %1149 = vmatprep.subr.bf16.mxu0 %v1277_v9  ;;  %1156 = vmatpush3.bf16.msra.mxu1 %v1280_v12  ;;  %v1042_v57 = vld [vmem:[%s1576_s3] ss:$0 sm:$0xff]  ;;  %s1446_s3 = smov [#allocation10]  }
  0x3d   :  { %1157 = vmatprep.subr.bf16.mxu1 %v1281_v13  ;;  %1159 = vmatprep.mubr.msk.bf16.mxu1 %vm131_vm0, %v1525_v14  ;;  %s1004_s13 = sshll.u32 %s1446_s3, 4  ;;  %s1005_s13 = int_to_ptr.vmem [resolvable:$true] %s1004_s13 }
  0x3e   :  { %s1412_s14 = scalar_lea.vmem %s1005_s13, 2048  ;;  %p1417_p7 = scmp.lt.s32.totalorder %s1005_s13, %s1005_s13 }
  0x3f   :  { %1150 = vmatpush3.bf16.msra.mxu0 %v1277_v9  ;;  %p1413_p6 = scmp.ne.s32.totalorder %s1005_s13, %s1412_s14  ;;  %p1418_p8 = scmp.lt.s32.totalorder %s1412_s14, %s1412_s14 }
  0x40   :  { %1163 = vmatprep.subr.bf16.mxu0 %v1284_v15  ;;  %1158 = vmatpush3.bf16.msra.mxu1 %v1281_v13 }
  0x41   :  { %1195 = vmatprep.subr.bf16.mxu1 %v1292_v24  ;;  %p1419_p9 = por %p1418_p8, %p1417_p7 }
  0x42   :  { %1152 = vmatmul.mubr.msk.bf16.vlgmr.msra.gmra.mxu0 %vm131_vm0, %v1523_v11 }
  0x43   :  { %1164 = vmatpush3.bf16.msra.mxu0 %v1284_v15  ;;  %1160 = vmatmul.mubr.msk.bf16.vlgmr.msra.gmra.mxu1 %vm131_vm0, %v1531_v17  ;;  %p1420_p10 = pnand %p1419_p9, %p1413_p6 }
  0x44   :  { %1165 = vmatprep.subr.bf16.mxu0 %v1285_v16  ;;  %1196 = vmatpush3.bf16.msra.mxu1 %v1292_v24 }
  0x45   :  { %1197 = vmatprep.subr.bf16.mxu1 %v1293_v25 }
  0x47   :  { %1166 = vmatpush3.bf16.msra.mxu0 %v1285_v16 }
  0x48   :  { %1167 = vmatprep.subr.bf16.mxu0 %v1286_v18  ;;  %1198 = vmatpush3.bf16.msra.mxu1 %v1293_v25 }
  0x49   :  { %1199 = vmatprep.subr.bf16.mxu1 %v1294_v50 }
  0x4b   :  { %1168 = vmatpush3.bf16.msra.mxu0 %v1286_v18 }
  0x4c   :  { %1169 = vmatprep.subr.bf16.mxu0 %v1287_v19  ;;  %1200 = vmatpush3.bf16.msra.mxu1 %v1294_v50 }
  0x4d   :  { %1201 = vmatprep.subr.bf16.mxu1 %v1295_v51 }
  0x4f   :  { %1170 = vmatpush3.bf16.msra.mxu0 %v1287_v19 }
  0x50   :  { %1171 = vmatprep.subr.bf16.mxu0 %v1288_v20  ;;  %1202 = vmatpush3.bf16.msra.mxu1 %v1295_v51 }
  0x51   :  { %1203 = vmatprep.subr.bf16.mxu1 %v1296_v52 }
  0x53   :  { %1172 = vmatpush3.bf16.msra.mxu0 %v1288_v20 }
  0x54   :  { %1173 = vmatprep.subr.bf16.mxu0 %v1289_v21  ;;  %1204 = vmatpush3.bf16.msra.mxu1 %v1296_v52 }
  0x55   :  { %1205 = vmatprep.subr.bf16.mxu1 %v1297_v53 }
  0x57   :  { %1174 = vmatpush3.bf16.msra.mxu0 %v1289_v21 }
  0x58   :  { %1175 = vmatprep.subr.bf16.mxu0 %v1290_v22  ;;  %1206 = vmatpush3.bf16.msra.mxu1 %v1297_v53 }
  0x59   :  { %1207 = vmatprep.subr.bf16.mxu1 %v1298_v54 }
  0x5b   :  { %1176 = vmatpush3.bf16.msra.mxu0 %v1290_v22 }
  0x5c   :  { %1177 = vmatprep.subr.bf16.mxu0 %v1291_v23  ;;  %1208 = vmatpush3.bf16.msra.mxu1 %v1298_v54 }
  0x5d   :  { %1209 = vmatprep.subr.bf16.mxu1 %v1299_v55 }
  0x5f   :  { %1178 = vmatpush3.bf16.msra.mxu0 %v1291_v23 }
  0x60   :  { %1210 = vmatpush3.bf16.msra.mxu1 %v1299_v55 }
  0xfa   :  { %v1137_v26 = vpop.f32.mrf.mxu0  ;;  %v1145_v27 = vpop.f32.mrf.mxu1 }
  0xfc   :  { %v172_v28 = vpop.f32.mrf.mxu0  ;;  %v249_v29 = vpop.f32.mrf.mxu1 }
  0xfe   :  { %v1138_v30 = vpop.f32.mrf.mxu0  ;;  %v1146_v31 = vpop.f32.mrf.mxu1 }
  0xff   :  { %v419_v35 = vpack.c.bf16 %v1138_v30, %v1137_v26  ;;  %v421_v44 = vpack.c.bf16 %v1146_v31, %v1145_v27 }
 0x100   :  { %v175_v32 = vpop.f32.mrf.mxu0  ;;  %v252_v34 = vpop.f32.mrf.mxu1 }
 0x101   :  { %v418_v33 = vpack.c.bf16 %v175_v32, %v172_v28  ;;  %v420_v36 = vpack.c.bf16 %v252_v34, %v249_v29 }
 0x102   :  { %v1153_v37 = vpop.f32.mrf.mxu0 }
 0x103   :  { %1179 = vmatprep.mubr.bf16.mxu0 %v418_v33  ;;  %v1161_v40 = vpop.f32.mrf.mxu1 }
 0x104   :  { %1180 = vmatmul.mubr.bf16.vlgmr.msra.gmra.mxu0 %v419_v35  ;;  %v326_v38 = vpop.f32.mrf.mxu0 }
 0x105   :  { %1183 = vmatprep.mubr.bf16.mxu0 %v420_v36  ;;  %v403_v42 = vpop.f32.mrf.mxu1 }
 0x106   :  { %v1154_v39 = vpop.f32.mrf.mxu0 }
 0x107   :  { %v1162_v45 = vpop.f32.mrf.mxu1  ;;  %v423_v48 = vpack.c.bf16 %v1154_v39, %v1153_v37 }
 0x108   :  { %v329_v41 = vpop.f32.mrf.mxu0  ;;  %v425_v49 = vpack.c.bf16 %v1162_v45, %v1161_v40 }
 0x109   :  { %v422_v43 = vpack.c.bf16 %v329_v41, %v326_v38  ;;  %v406_v46 = vpop.f32.mrf.mxu1 }
 0x10a   :  { %v424_v47 = vpack.c.bf16 %v406_v46, %v403_v42 }
 0x10c   :  { %1184 = vmatmul.mubr.bf16.gmra.mxu0 %v421_v44 }
 0x10d   :  { %1187 = vmatprep.mubr.bf16.mxu0 %v422_v43 }
 0x114   :  { %1188 = vmatmul.mubr.bf16.gmra.mxu0 %v423_v48 }
 0x115   :  { %1191 = vmatprep.mubr.bf16.mxu0 %v424_v47 }
 0x11c   :  { %1192 = vmatmul.mubr.bf16.gmra.mxu0 %v425_v49 }
 0x11d   :  { %1231 = vmatprep.mubr.msk.bf16.mxu0 %vm131_vm0, %v1503_v4 }
 0x1c4   :  { %v1181_v56 = vpop.f32.mrf.mxu0 }
 0x1c5   :  { %v540_v62 = vadd.f32 %v1181_v56, %v1042_v57 }
 0x1c6   :  { %v531_v58 = vpop.f32.mrf.mxu0 }
 0x1c7   :  { %v532_v59 = vadd.f32 %v1042_v57, %v531_v58 }
 0x1c8   :  { %v1182_v60 = vpop.f32.mrf.mxu0 }
 0x1c9   :  { %v543_v61 = vadd.f32 %v1182_v60, %v1042_v57  ;;  %1300 = vtanh.f32 %v532_v59 }
 0x1ca   :  { %v534_v63 = vpop.f32.mrf.mxu0 }
 0x1cb   :  { %v535_v0 = vadd.f32 %v1042_v57, %v534_v63  ;;  %1302 = vtanh.f32 %v543_v61 }
 0x1cc   :  { %v1185_v1 = vpop.f32.mrf.mxu0 }
 0x1cd   :  { %1304 = vtanh.f32 %v535_v0  ;;  %v556_v9 = vadd.f32 %v1185_v1, %v1042_v57 }
 0x1ce   :  { %1306 = vtanh.f32 %v540_v62  ;;  %v547_v2 = vpop.f32.mrf.mxu0 }
 0x1cf   :  { %v548_v3 = vadd.f32 %v1042_v57, %v547_v2 }
 0x1d0   :  { %v1186_v4 = vpop.f32.mrf.mxu0 }
 0x1d1   :  { %v559_v8 = vadd.f32 %v1186_v4, %v1042_v57  ;;  %1308 = vtanh.f32 %v548_v3 }
 0x1d2   :  { %v550_v12 = vpop.f32.mrf.mxu0 }
 0x1d3   :  { %v551_v13 = vadd.f32 %v1042_v57, %v550_v12  ;;  %1310 = vtanh.f32 %v559_v8 }
 0x1d4   :  { %v1189_v15 = vpop.f32.mrf.mxu0 }
 0x1d5   :  { %1312 = vtanh.f32 %v551_v13  ;;  %v572_v24 = vadd.f32 %v1189_v15, %v1042_v57 }
 0x1d6   :  { %1314 = vtanh.f32 %v556_v9  ;;  %v563_v16 = vpop.f32.mrf.mxu0  ;;  %v1301_v19 = vpop.eup %1300 }
 0x1d7   :  { %v564_v18 = vadd.f32 %v1042_v57, %v563_v16 }
 0x1d8   :  { %v1190_v20 = vpop.f32.mrf.mxu0  ;;  %v1303_v21 = vpop.eup %1302 }
 0x1d9   :  { %v575_v22 = vadd.f32 %v1190_v20, %v1042_v57  ;;  %1316 = vtanh.f32 %v564_v18 }
 0x1da   :  { %v1305_v23 = vpop.eup %1304  ;;  %v566_v25 = vpop.f32.mrf.mxu0 }
 0x1db   :  { %v1307_v26 = vpop.eup %1306  ;;  %v567_v27 = vadd.f32 %v1042_v57, %v566_v25  ;;  %v610_v28 = vpack.c.bf16 %v1305_v23, %v1301_v19  ;;  %1318 = vtanh.f32 %v575_v22 }
 0x1dc   :  { %v1193_v29 = vpop.f32.mrf.mxu0  ;;  %v611_v30 = vpack.c.bf16 %v1303_v21, %v1307_v26 }
 0x1dd   :  { %1320 = vtanh.f32 %v567_v27  ;;  %1211 = vmatprep.mubr.bf16.mxu1 %v610_v28  ;;  %v588_v38 = vadd.f32 %v1193_v29, %v1042_v57 }
 0x1de   :  { %1322 = vtanh.f32 %v572_v24  ;;  %v579_v31 = vpop.f32.mrf.mxu0  ;;  %1212 = vmatmul.mubr.bf16.vlgmr.msra.gmra.mxu1 %v611_v30  ;;  %v1309_v33 = vpop.eup %1308 }
 0x1df   :  { %v580_v32 = vadd.f32 %v1042_v57, %v579_v31 }
 0x1e0   :  { %v1194_v34 = vpop.f32.mrf.mxu0  ;;  %v1311_v35 = vpop.eup %1310 }
 0x1e1   :  { %v591_v36 = vadd.f32 %v1194_v34, %v1042_v57  ;;  %1324 = vtanh.f32 %v580_v32 }
 0x1e2   :  { %v1313_v37 = vpop.eup %1312  ;;  %v582_v39 = vpop.f32.mrf.mxu0 }
 0x1e3   :  { %v1315_v40 = vpop.eup %1314  ;;  %v583_v41 = vadd.f32 %v1042_v57, %v582_v39  ;;  %v612_v42 = vpack.c.bf16 %v1313_v37, %v1309_v33  ;;  %1326 = vtanh.f32 %v591_v36 }
 0x1e4   :  { %v613_v43 = vpack.c.bf16 %v1311_v35, %v1315_v40 }
 0x1e5   :  { %1328 = vtanh.f32 %v583_v41  ;;  %1215 = vmatprep.mubr.bf16.mxu1 %v612_v42 }
 0x1e6   :  { %1330 = vtanh.f32 %v588_v38  ;;  %1216 = vmatmul.mubr.bf16.gmra.mxu1 %v613_v43  ;;  %v1317_v44 = vpop.eup %1316 }
 0x1e8   :  { %v1319_v45 = vpop.eup %1318 }
 0x1ea   :  { %v1321_v46 = vpop.eup %1320 }
 0x1eb   :  { %v1323_v47 = vpop.eup %1322  ;;  %v614_v48 = vpack.c.bf16 %v1321_v46, %v1317_v44 }
 0x1ec   :  { %v615_v49 = vpack.c.bf16 %v1319_v45, %v1323_v47 }
 0x1ed   :  { %1219 = vmatprep.mubr.bf16.mxu1 %v614_v48 }
 0x1ee   :  { %1220 = vmatmul.mubr.bf16.gmra.mxu1 %v615_v49  ;;  %v1325_v50 = vpop.eup %1324 }
 0x1f0   :  { %v1327_v51 = vpop.eup %1326 }
 0x1f2   :  { %v1329_v52 = vpop.eup %1328 }
 0x1f3   :  { %v1331_v53 = vpop.eup %1330  ;;  %v616_v54 = vpack.c.bf16 %v1329_v52, %v1325_v50 }
 0x1f4   :  { %v617_v55 = vpack.c.bf16 %v1327_v51, %v1331_v53 }
 0x1f5   :  { %1223 = vmatprep.mubr.bf16.mxu1 %v616_v54 }
 0x1f6   :  { %1224 = vmatmul.mubr.bf16.gmra.mxu1 %v617_v55 }
 0x1f7   :  { %1239 = vmatprep.mubr.msk.bf16.mxu1 %vm131_vm0, %v1509_v6 }
 0x29e   :  { %v1213_v56 = vpop.f32.mrf.mxu1 }
 0x2a0   :  { %v716_v57 = vpop.f32.mrf.mxu1 }
 0x2a2   :  { %v1214_v58 = vpop.f32.mrf.mxu1 }
 0x2a3   :  { %v780_v59 = vpack.c.bf16 %v1214_v58, %v1213_v56 }
 0x2a4   :  { %v719_v60 = vpop.f32.mrf.mxu1 }
 0x2a5   :  { %v779_v61 = vpack.c.bf16 %v719_v60, %v716_v57  ;;  %1227 = vmatprep.subr.bf16.mxu0 %v780_v59 }
 0x2a6   :  { %v1217_v62 = vpop.f32.mrf.mxu1  ;;  %1228 = vmatpush3.bf16.msra.mxu0 %v780_v59 }
 0x2a7   :  { %1229 = vmatprep.subr.bf16.mxu0 %v779_v61 }
 0x2a8   :  { %v732_v63 = vpop.f32.mrf.mxu1 }
 0x2aa   :  { %v1218_v0 = vpop.f32.mrf.mxu1  ;;  %1230 = vmatpush3.bf16.msra.mxu0 %v779_v61 }
 0x2ab   :  { %v782_v1 = vpack.c.bf16 %v1218_v0, %v1217_v62 }
 0x2ac   :  { %v735_v2 = vpop.f32.mrf.mxu1 }
 0x2ad   :  { %v781_v3 = vpack.c.bf16 %v735_v2, %v732_v63  ;;  %1235 = vmatprep.subr.bf16.mxu1 %v782_v1  ;;  %1232 = vmatmul.mubr.msk.bf16.vlgmr.msra.gmra.mxu0 %vm131_vm0, %v1505_v5 }
 0x2ae   :  { %v1221_v6 = vpop.f32.mrf.mxu1  ;;  %1236 = vmatpush3.bf16.msra.mxu1 %v782_v1  ;;  %1247 = vmatprep.mubr.msk.bf16.mxu0 %vm131_vm0, %v1517_v10 }
 0x2af   :  { %1237 = vmatprep.subr.bf16.mxu1 %v781_v3 }
 0x2b0   :  { %v748_v4 = vpop.f32.mrf.mxu1 }
 0x2b2   :  { %v1222_v8 = vpop.f32.mrf.mxu1  ;;  %1238 = vmatpush3.bf16.msra.mxu1 %v781_v3 }
 0x2b3   :  { %v784_v9 = vpack.c.bf16 %v1222_v8, %v1221_v6 }
 0x2b4   :  { %v751_v12 = vpop.f32.mrf.mxu1 }
 0x2b5   :  { %v783_v13 = vpack.c.bf16 %v751_v12, %v748_v4  ;;  %1243 = vmatprep.subr.bf16.mxu0 %v784_v9  ;;  %1240 = vmatmul.mubr.msk.bf16.vlgmr.msra.gmra.mxu1 %vm131_vm0, %v1511_v7 }
 0x2b6   :  { %v1225_v15 = vpop.f32.mrf.mxu1  ;;  %1244 = vmatpush3.bf16.msra.mxu0 %v784_v9  ;;  %1255 = vmatprep.mubr.msk.bf16.mxu1 %vm131_vm0, %v1525_v14 }
 0x2b7   :  { %1245 = vmatprep.subr.bf16.mxu0 %v783_v13 }
 0x2b8   :  { %v764_v5 = vpop.f32.mrf.mxu1 }
 0x2ba   :  { %v1226_v16 = vpop.f32.mrf.mxu1  ;;  %1246 = vmatpush3.bf16.msra.mxu0 %v783_v13 }
 0x2bb   :  { %v786_v10 = vpack.c.bf16 %v1226_v16, %v1225_v15 }
 0x2bc   :  { %v767_v18 = vpop.f32.mrf.mxu1 }
 0x2bd   :  { %v785_v19 = vpack.c.bf16 %v767_v18, %v764_v5  ;;  %1251 = vmatprep.subr.bf16.mxu1 %v786_v10  ;;  %1248 = vmatmul.mubr.msk.bf16.vlgmr.msra.gmra.mxu0 %vm131_vm0, %v1523_v11 }
 0x2be   :  { %1252 = vmatpush3.bf16.msra.mxu1 %v786_v10 }
 0x2bf   :  { %1253 = vmatprep.subr.bf16.mxu1 %v785_v19 }
 0x2c2   :  { %1254 = vmatpush3.bf16.msra.mxu1 %v785_v19 }
 0x2c5   :  { %1256 = vmatmul.mubr.msk.bf16.vlgmr.msra.gmra.mxu1 %vm131_vm0, %v1531_v17 }
 0x36d   :  { %v1233_v7 = vpop.f32.mrf.mxu0 }
 0x36e   :  { %985 = vst.msk [vmem:[#allocation10 + $0x10] sm:$0xff] %vm131_vm0, %v1233_v7 }
 0x36f   :  { %v821_v14 = vpop.f32.mrf.mxu0 }
 0x370   :  { %983 = vst.msk [vmem:[#allocation10] sm:$0xff] %vm131_vm0, %v821_v14 }
 0x371   :  { %v1234_v20 = vpop.f32.mrf.mxu0 }
 0x372   :  { %986 = vst.msk [vmem:[#allocation10 + $0x18] sm:$0xff] %vm131_vm0, %v1234_v20 }
 0x373   :  { %v824_v21 = vpop.f32.mrf.mxu0 }
 0x374   :  { %984 = vst.msk [vmem:[#allocation10 + $0x8] sm:$0xff] %vm131_vm0, %v824_v21 }
 0x375   :  { %v1241_v22 = vpop.f32.mrf.mxu1 }
 0x376   :  { %989 = vst.msk [vmem:[#allocation10 + $0x30] sm:$0xff] %vm131_vm0, %v1241_v22 }
 0x377   :  { %v870_v11 = vpop.f32.mrf.mxu1 }
 0x378   :  { %987 = vst.msk [vmem:[#allocation10 + $0x20] sm:$0xff] %vm131_vm0, %v870_v11 }
 0x379   :  { %v1242_v23 = vpop.f32.mrf.mxu1 }
 0x37a   :  { %990 = vst.msk [vmem:[#allocation10 + $0x38] sm:$0xff] %vm131_vm0, %v1242_v23 }
 0x37b   :  { %v873_v17 = vpop.f32.mrf.mxu1 }
 0x37c   :  { %988 = vst.msk [vmem:[#allocation10 + $0x28] sm:$0xff] %vm131_vm0, %v873_v17 }
 0x37d   :  { %v1249_v24 = vpop.f32.mrf.mxu0 }
 0x37e   :  { %993 = vst.msk [vmem:[#allocation10 + $0x50] sm:$0xff] %vm131_vm0, %v1249_v24 }
 0x37f   :  { %v919_v25 = vpop.f32.mrf.mxu0 }
 0x380   :  { %991 = vst.msk [vmem:[#allocation10 + $0x40] sm:$0xff] %vm131_vm0, %v919_v25 }
 0x381   :  { %v1250_v26 = vpop.f32.mrf.mxu0 }
 0x382   :  { %994 = vst.msk [vmem:[#allocation10 + $0x58] sm:$0xff] %vm131_vm0, %v1250_v26 }
 0x383   :  { %v922_v27 = vpop.f32.mrf.mxu0 }
 0x384   :  { %992 = vst.msk [vmem:[#allocation10 + $0x48] sm:$0xff] %vm131_vm0, %v922_v27 }
 0x385   :  { %v1257_v28 = vpop.f32.mrf.mxu1 }
 0x386   :  { %997 = vst.msk [vmem:[#allocation10 + $0x70] sm:$0xff] %vm131_vm0, %v1257_v28 }
 0x387   :  { %v968_v29 = vpop.f32.mrf.mxu1 }
 0x388   :  { %995 = vst.msk [vmem:[#allocation10 + $0x60] sm:$0xff] %vm131_vm0, %v968_v29 }
 0x389   :  { %v1258_v30 = vpop.f32.mrf.mxu1 }
 0x38a   :  { %998 = vst.msk [vmem:[#allocation10 + $0x78] sm:$0xff] %vm131_vm0, %v1258_v30 }
 0x38b   :  { %v971_v31 = vpop.f32.mrf.mxu1 }
 0x38c   :  { %996 = vst.msk [vmem:[#allocation10 + $0x68] sm:$0xff] %vm131_vm0, %v971_v31 }
 0x38d   :  { %1423 = shalt.err (!%p1420_p10)
}
 0x38e   :  { %s1447_s15 = smov 128   ;;  %s1448_s16 = smov 8  }
 0x38f   :  { %1010 = dma.vmem_to_hbm [thread:$0]  %s1005_s13, 2048, %s1578_s5, [#allocation4], %s1447_s15, %s1447_s15, %s1448_s16  }
 0x390   :  { %1438 = dma.done.wait [#allocation4], 2048  }
 0x391   :  { %1439 = vsyncadd [#allocation4], 4294965248 }
 0x392   :  { %1014 = vsyncpa [#allocation3], 1 }
 0x393   :  { %1015 = vsyncpa [#allocation6], 1 }
 0x394   :  { %1016 = vsyncpa [#allocation9], 1 }
 0x395   :  { %1017 = vsyncpa [#allocation4], 1 }

</bundles_post_ra>
